<compile_context>
chip_gen: v6e
topology: v6e:2x2x1
jax: 0.10.0
libtpu: 0.0.40
codegen_flags: <defaults>
</compile_context>

<pallas_src>
import jax
import jax.numpy as jnp
from jax.experimental import pallas as pl
from jax.experimental.pallas import tpu as pltpu

EPS = 1e-5


def _conv3x3_lane_flat(xt, w3_mat):
    """3x3 'same' conv on one halo tile.

    xt:     (Cin, TR+2, W+2) f32 zero-padded input rows for this tile.
    w3_mat: (Cin, 9*Cin) f32, column index = (3*dy+dx)*Cin + ci.
    returns (Cin, TR*W) f32 — channels on sublanes, flat spatial on lanes.
    """
    cin, trp2, wp = xt.shape
    tr, w = trp2 - 2, wp - 2
    pats = []
    for dy in range(3):
        for dx in range(3):
            pats.append(xt[:, dy:dy + tr, dx:dx + w].reshape(cin, tr * w))
    patches = jnp.concatenate(pats, axis=0)                    # (9*Cin, TR*W)
    return jnp.dot(w3_mat, patches, preferred_element_type=jnp.float32)


def _conv_stats_kernel(xt_ref, w3_ref, stats_ref):
    """Pass 1: conv3x3 + per-tile per-channel (sum, sum-of-squares)."""
    y = _conv3x3_lane_flat(xt_ref[0], w3_ref[...])             # (Cin, S)
    s1 = jnp.sum(y, axis=1, keepdims=True)                     # (Cin, 1)
    s2 = jnp.sum(y * y, axis=1, keepdims=True)                 # (Cin, 1)
    stats_ref[0] = jnp.concatenate([s1, s2], axis=1)           # (Cin, 2)


def _norm_seg_kernel(xt_ref, w3_ref, scale_ref, shift_ref, wseg_ref, bseg_ref,
                     out_ref):
    """Pass 2: conv3x3 (recomputed) -> fused BN+ReLU -> 1x1 conv."""
    y = _conv3x3_lane_flat(xt_ref[0], w3_ref[...])             # (Cin, S)
    z = jnp.maximum(y * scale_ref[...] + shift_ref[...], 0.0)  # BN+ReLU, 1 FMA
    out = jnp.dot(wseg_ref[...], z, preferred_element_type=jnp.float32)
    out_ref[0] = out + bseg_ref[...]                           # (Cout, S)


def _pick_block_rows(H, W, Cin, vmem_budget_bytes=2 << 20):
    """Largest row-tile TR with H % TR == 0, lane-dense output stores
    (TR*W % 128 == 0, or TR == H so the block equals the full dim) and a
    small per-tile VMEM footprint (conservative for v7x's 64 MiB VMEM)."""
    valid = [tr for tr in range(1, H + 1)
             if H % tr == 0 and (tr == H or (tr * W) % 128 == 0)]
    best = valid[0]
    for tr in valid:
        halo = Cin * (tr + 2) * (W + 2) * 4          # input halo tile
        work = 10 * Cin * tr * W * 4                 # 9 patches + conv acc
        if 2 * halo + work <= vmem_budget_bytes:     # 2x: double buffering
            best = tr
    return best


def seg_head_forward(x, w3_hwio, b3, gamma, beta, wseg_io, bseg,
                     *, block_rows=None):
    """x: (N, Cin, H, W) float32 (NCHW).  Returns (N, Cout, H, W) float32."""
    N, Cin, H, W = x.shape
    Cout = wseg_io.shape[1]
    Wp = W + 2

    TR = _pick_block_rows(H, W, Cin) if block_rows is None else block_rows
    assert H % TR == 0 and (TR == H or (TR * W) % 128 == 0), (TR, H, W)
    R = H // TR
    NR = N * R
    S = TR * W                                       # flat spatial per tile

    # b3 intentionally unused: a per-channel constant added before
    # training-mode BatchNorm is exactly cancelled by the mean subtraction
    # and leaves the variance unchanged.
    del b3

    # SAME padding for 3x3/stride 1, then per-tile halo rows (duplicates only
    # 2 rows per tile so BlockSpec tiles are non-overlapping).
    xpad = jnp.pad(x, ((0, 0), (0, 0), (1, 1), (1, 1)))
    xt = jnp.stack([xpad[:, :, r * TR:r * TR + TR + 2, :] for r in range(R)],
                   axis=1)                           # (N, R, Cin, TR+2, Wp)
    xt = xt.reshape(NR, Cin, TR + 2, Wp)

    # HWIO (3,3,Cin,Cin) -> (Cin_out, 9*Cin_in), column = (3*dy+dx)*Cin + ci.
    w3_mat = jnp.transpose(w3_hwio, (3, 0, 1, 2)).reshape(Cin, 9 * Cin)

    parallel = pltpu.CompilerParams(
        dimension_semantics=("parallel", "parallel"))

    halo_spec = pl.BlockSpec((1, Cin, TR + 2, Wp),
                             lambda n, r: (n * R + r, 0, 0, 0))
    w3_spec = pl.BlockSpec((Cin, 9 * Cin), lambda n, r: (0, 0))

    # ---- pass 1: conv3x3 + partial BN statistics per tile ----
    stats = pl.pallas_call(
        _conv_stats_kernel,
        out_shape=jax.ShapeDtypeStruct((NR, Cin, 2), jnp.float32),
        grid=(N, R),
        in_specs=[halo_spec, w3_spec],
        out_specs=pl.BlockSpec((1, Cin, 2), lambda n, r: (n * R + r, 0, 0)),
        compiler_params=parallel,
    )(xt, w3_mat)

    # Combine partials -> batch statistics -> fused BN scale/shift (f32).
    cnt = float(N * H * W)
    mean = jnp.sum(stats[:, :, 0], axis=0) / cnt
    var = jnp.maximum(jnp.sum(stats[:, :, 1], axis=0) / cnt - mean * mean, 0.0)
    scale = gamma * jax.lax.rsqrt(var + EPS)
    shift = beta - mean * scale

    # ---- pass 2: conv3x3 (recompute) -> BN+ReLU (one FMA) -> 1x1 conv ----
    out_hw = pl.pallas_call(
        _norm_seg_kernel,
        out_shape=jax.ShapeDtypeStruct((N, Cout, H * W), jnp.float32),
        grid=(N, R),
        in_specs=[
            halo_spec,
            w3_spec,
            pl.BlockSpec((Cin, 1), lambda n, r: (0, 0)),      # BN scale
            pl.BlockSpec((Cin, 1), lambda n, r: (0, 0)),      # BN shift
            pl.BlockSpec((Cout, Cin), lambda n, r: (0, 0)),   # 1x1 weights
            pl.BlockSpec((Cout, 1), lambda n, r: (0, 0)),     # 1x1 bias
        ],
        out_specs=pl.BlockSpec((1, Cout, S), lambda n, r: (n, 0, r)),
        compiler_params=parallel,
    )(xt, w3_mat, scale.reshape(Cin, 1), shift.reshape(Cin, 1),
      jnp.transpose(wseg_io), bseg.reshape(Cout, 1))

    return out_hw.reshape(N, Cout, H, W)             # already NCHW


def reference_forward(x, w3_hwio, b3, gamma, beta, wseg_io, bseg):
    """Pure-JAX reference matching PyTorch Seg_Head.forward (training-mode BN)."""
    w_oihw = jnp.transpose(w3_hwio, (3, 2, 0, 1))    # HWIO -> OIHW
    y = jax.lax.conv_general_dilated(
        x, w_oihw, window_strides=(1, 1), padding="SAME",
        dimension_numbers=("NCHW", "OIHW", "NCHW"))
    y = y + b3[None, :, None, None]
    mean = jnp.mean(y, axis=(0, 2, 3), keepdims=True)
    var = jnp.mean((y - mean) ** 2, axis=(0, 2, 3), keepdims=True)
    y = (y - mean) * jax.lax.rsqrt(var + EPS)
    y = y * gamma[None, :, None, None] + beta[None, :, None, None]
    y = jnp.maximum(y, 0.0)
    out = jnp.einsum("nchw,co->nohw", y, wseg_io) + bseg[None, :, None, None]
    return out


if __name__ == "__main__":
    key = jax.random.PRNGKey(0)
    N, Cin, Cout, H, W = 2, 4, 3, 16, 16

    ks = jax.random.split(key, 7)
    x = jax.random.normal(ks[0], (N, Cin, H, W), jnp.float32)
    w3 = jax.random.normal(ks[1], (3, 3, Cin, Cin), jnp.float32) * 0.1  # HWIO
    b3 = jax.random.normal(ks[2], (Cin,), jnp.float32) * 0.1
    gamma = 1.0 + 0.1 * jax.random.normal(ks[3], (Cin,), jnp.float32)
    beta = 0.1 * jax.random.normal(ks[4], (Cin,), jnp.float32)
    wseg = jax.random.normal(ks[5], (Cin, Cout), jnp.float32) * 0.1     # (Cin,Cout)
    bseg = jax.random.normal(ks[6], (Cout,), jnp.float32) * 0.1

    # block_rows=8 -> grid (N=2, R=2), exercising the halo/row-tiling path.
    out = seg_head_forward(x, w3, b3, gamma, beta, wseg, bseg, block_rows=8)
    out = jax.block_until_ready(out)

    ref = reference_forward(x, w3, b3, gamma, beta, wseg, bseg)
    assert out.shape == (N, Cout, H, W)
    err = float(jnp.max(jnp.abs(out - ref)))
    assert jnp.allclose(out, ref, rtol=1e-4, atol=1e-4), err

    print("KERNEL_OK")
</pallas_src>

<mosaic_0001>
module attributes {stable_mosaic.version = 11 : i64} {
  func.func @_conv_stats_kernel(%arg0: i32, %arg1: i32, %arg2: memref<1x4x10x18xf32, #tpu.memory_space<vmem>>, %arg3: memref<4x36xf32, #tpu.memory_space<vmem>>, %arg4: memref<1x4x2xf32, #tpu.memory_space<vmem>>) attributes {dimension_semantics = [#tpu.dimension_semantics<parallel>, #tpu.dimension_semantics<parallel>], iteration_bounds = array<i64: 2, 2>, scalar_prefetch = 0 : i64, scratch_operands = 0 : i64, tpu.core_type = #tpu.core_type<tc>, window_params = [{transform_indices = @transform_0, window_bounds = array<i64: 1, 4, 10, 18>}, {pipeline_mode = #tpu.pipeline_mode<synchronous>, transform_indices = @transform_1, window_bounds = array<i64: 4, 36>}, {transform_indices = @transform_2, window_bounds = array<i64: 1, 4, 2>}]} {
    %c0 = arith.constant 0 : index
    %c0_0 = arith.constant 0 : index
    %c0_1 = arith.constant 0 : index
    %c0_2 = arith.constant 0 : index
    %0 = vector.load %arg2[%c0, %c0_0, %c0_1, %c0_2] : memref<1x4x10x18xf32, #tpu.memory_space<vmem>>, vector<1x4x10x18xf32>
    %1 = vector.shape_cast %0 : vector<1x4x10x18xf32> to vector<4x10x18xf32>
    %c0_3 = arith.constant 0 : index
    %c0_4 = arith.constant 0 : index
    %2 = vector.load %arg3[%c0_3, %c0_4] : memref<4x36xf32, #tpu.memory_space<vmem>>, vector<4x36xf32>
    %3 = vector.extract_strided_slice %1 {offsets = [0, 0, 0], sizes = [4, 8, 16], strides = [1, 1, 1]} : vector<4x10x18xf32> to vector<4x8x16xf32>
    %4 = vector.shape_cast %3 : vector<4x8x16xf32> to vector<4x128xf32>
    %5 = vector.extract_strided_slice %1 {offsets = [0, 0, 1], sizes = [4, 8, 16], strides = [1, 1, 1]} : vector<4x10x18xf32> to vector<4x8x16xf32>
    %6 = vector.shape_cast %5 : vector<4x8x16xf32> to vector<4x128xf32>
    %7 = vector.extract_strided_slice %1 {offsets = [0, 0, 2], sizes = [4, 8, 16], strides = [1, 1, 1]} : vector<4x10x18xf32> to vector<4x8x16xf32>
    %8 = vector.shape_cast %7 : vector<4x8x16xf32> to vector<4x128xf32>
    %9 = vector.extract_strided_slice %1 {offsets = [0, 1, 0], sizes = [4, 8, 16], strides = [1, 1, 1]} : vector<4x10x18xf32> to vector<4x8x16xf32>
    %10 = vector.shape_cast %9 : vector<4x8x16xf32> to vector<4x128xf32>
    %11 = vector.extract_strided_slice %1 {offsets = [0, 1, 1], sizes = [4, 8, 16], strides = [1, 1, 1]} : vector<4x10x18xf32> to vector<4x8x16xf32>
    %12 = vector.shape_cast %11 : vector<4x8x16xf32> to vector<4x128xf32>
    %13 = vector.extract_strided_slice %1 {offsets = [0, 1, 2], sizes = [4, 8, 16], strides = [1, 1, 1]} : vector<4x10x18xf32> to vector<4x8x16xf32>
    %14 = vector.shape_cast %13 : vector<4x8x16xf32> to vector<4x128xf32>
    %15 = vector.extract_strided_slice %1 {offsets = [0, 2, 0], sizes = [4, 8, 16], strides = [1, 1, 1]} : vector<4x10x18xf32> to vector<4x8x16xf32>
    %16 = vector.shape_cast %15 : vector<4x8x16xf32> to vector<4x128xf32>
    %17 = vector.extract_strided_slice %1 {offsets = [0, 2, 1], sizes = [4, 8, 16], strides = [1, 1, 1]} : vector<4x10x18xf32> to vector<4x8x16xf32>
    %18 = vector.shape_cast %17 : vector<4x8x16xf32> to vector<4x128xf32>
    %19 = vector.extract_strided_slice %1 {offsets = [0, 2, 2], sizes = [4, 8, 16], strides = [1, 1, 1]} : vector<4x10x18xf32> to vector<4x8x16xf32>
    %20 = vector.shape_cast %19 : vector<4x8x16xf32> to vector<4x128xf32>
    %21 = tpu.concatenate %4, %6, %8, %10, %12, %14, %16, %18, %20 in 0 : vector<4x128xf32>, vector<4x128xf32>, vector<4x128xf32>, vector<4x128xf32>, vector<4x128xf32>, vector<4x128xf32>, vector<4x128xf32>, vector<4x128xf32>, vector<4x128xf32> -> vector<36x128xf32>
    %cst = arith.constant dense<0.000000e+00> : vector<4x128xf32>
    %22 = tpu.matmul %2, %21, %cst {dimension_numbers = #tpu.dot_dimension_numbers<[1], [0], [0], [1], [0, 0, 1, 1], [], []>} : vector<4x36xf32>, vector<36x128xf32>, vector<4x128xf32> -> vector<4x128xf32>
    %cst_5 = arith.constant dense<0.000000e+00> : vector<4xf32>
    %23 = vector.multi_reduction <add>, %22, %cst_5 [1] : vector<4x128xf32> to vector<4xf32>
    %24 = vector.shape_cast %23 : vector<4xf32> to vector<4x1xf32>
    %25 = arith.mulf %22, %22 : vector<4x128xf32>
    %cst_6 = arith.constant dense<0.000000e+00> : vector<4xf32>
    %26 = vector.multi_reduction <add>, %25, %cst_6 [1] : vector<4x128xf32> to vector<4xf32>
    %27 = vector.shape_cast %26 : vector<4xf32> to vector<4x1xf32>
    %28 = tpu.concatenate %24, %27 in 1 : vector<4x1xf32>, vector<4x1xf32> -> vector<4x2xf32>
    %c0_7 = arith.constant 0 : index
    %c0_8 = arith.constant 0 : index
    %c0_9 = arith.constant 0 : index
    %29 = vector.load %arg4[%c0_7, %c0_8, %c0_9] : memref<1x4x2xf32, #tpu.memory_space<vmem>>, vector<1x4x2xf32>
    %30 = vector.shape_cast %29 : vector<1x4x2xf32> to vector<4x2xf32>
    %31 = vector.shape_cast %28 : vector<4x2xf32> to vector<1x4x2xf32>
    tpu.vector_store %arg4[%c0_7, %c0_8, %c0_9], %31 {strides = array<i32>} : memref<1x4x2xf32, #tpu.memory_space<vmem>>, vector<1x4x2xf32>,
    return
  }
  func.func @transform_0(%arg0: i32, %arg1: i32) -> (i32, i32, i32, i32) {
    %c2_i32 = arith.constant 2 : i32
    %0 = arith.muli %arg0, %c2_i32 : i32
    %1 = arith.addi %0, %arg1 : i32
    %c0_i32 = arith.constant 0 : i32
    %c0_i32_0 = arith.constant 0 : i32
    %c0_i32_1 = arith.constant 0 : i32
    %c0_i32_2 = arith.constant 0 : i32
    return %1, %c0_i32, %c0_i32_0, %c0_i32_1 : i32, i32, i32, i32
  }
  func.func @transform_1(%arg0: i32, %arg1: i32) -> (i32, i32) {
    %c0_i32 = arith.constant 0 : i32
    %c0_i32_0 = arith.constant 0 : i32
    %c0_i32_1 = arith.constant 0 : i32
    return %c0_i32, %c0_i32_0 : i32, i32
  }
  func.func @transform_2(%arg0: i32, %arg1: i32) -> (i32, i32, i32) {
    %c2_i32 = arith.constant 2 : i32
    %0 = arith.muli %arg0, %c2_i32 : i32
    %1 = arith.addi %0, %arg1 : i32
    %c0_i32 = arith.constant 0 : i32
    %c0_i32_0 = arith.constant 0 : i32
    %c0_i32_1 = arith.constant 0 : i32
    return %1, %c0_i32, %c0_i32_0 : i32, i32, i32
  }
}

</mosaic_0001>

<bundles_post_ra>
// kernel: tpu_custom_call.1
= control target key start
LH: loop header
LB: loop body
LE: loop exit
PB: predicated region body
PF: predicated region fallthrough
CT: control target
= control target key end

     0   :  { %s1570_s9 = smov 0   ;;  %s1572_s10 = smov 0   ;;  %s2153_s0 = inlined_call_operand.vmem [shape: f32[4,4,10,18], index: 0, kind: input, shape index: {}]   ;;  %s2154_s1 = inlined_call_operand.vmem [shape: f32[4,36], index: 1, kind: input, shape index: {}]   ;;  %s2155_s2 = inlined_call_operand.vmem [shape: f32[4,4,2], index: 2, kind: output, shape index: {}]  }
   0x1   :  { %s1574_s11 = smov 0   ;;  %s1576_s12 = smov 0  }
   0x2   :  { %s1578_s13 = smov 0  }
   0x3 LB: > { %s21_s14 = sadd.s32 1, %s1532_s11  ;;  %s24_s15 = sadd.s32 1, %s1536_s12  ;;  %s1540_s13 = sphi %s1578_s13, %s12_s13   ;;  %s1536_s12 = sphi %s1576_s12, %s2159_s12   ;;  %s1532_s11 = sphi %s1574_s11, %s2158_s11   ;;  %s1528_s10 = sphi %s1572_s10, %s2157_s10   ;;  %s1524_s9 = sphi %s1570_s9, %s2156_s9  }
   0x4   : > { %p22_p0 = scmp.ge.s32.totalorder %s21_s14, 2  ;;  %p1419_p1 = scmp.ge.s32.totalorder %s1540_s13, 1 }
   0x5   : > { %p136_p2 = scmp.lt.s32.totalorder %s1540_s13, 5 }
   0x6   : > { %s2161_s14 = smov (%p22_p0, %s21_s14), 0  ;;  %s2163_s15 = smov (!%p22_p0, %s24_s15), %s1536_s12 }
   0x7   : > { %p137_p3 = pnand %p1419_p1, %p136_p2  ;;  %p26_p4 = scmp.ge.s32.totalorder %s2163_s15, 2 }
   0x8   : > { %s1420_s16 = sshll.u32 (!%p137_p3), %s1528_s10, 1  ;;  %s1543_s22 = smov (!%p137_p3), 127  }
   0x9   : > { %s2165_s15 = smov (%p26_p4, %s2163_s15), 0  ;;  %140 = sbr.rel (%p137_p3) target bundleno = 735 (0x2df), region = 28 }
   0xa   : > { %s162_s17 = sadd.s32 (!%p137_p3), %s1524_s9, %s1420_s16  ;;  %s1544_s23 = smov (!%p137_p3), 126  }
   0xb   : > { %p163_p5 = scmp.lt.s32.totalorder (!%p137_p3), %s162_s17, 3  ;;  %s1547_s24 = smov (!%p137_p3), 16  }
   0xc   : > { %s1548_s25 = smov (!%p137_p3), 32   ;;  %s1549_s26 = smov (!%p137_p3), 48  }
   0xd   : > { %s1550_s27 = smov (!%p137_p3), 64   ;;  %s1551_s28 = smov (!%p137_p3), 80  }
   0xe   : > { %v1542_v0 = vmov 0.0   ;;  %s2167_s17 = smov (!%p163_p5, %s162_s17), 3  ;;  %vm885_vm0 = vcmask 1045504   ;;  %vm535_vm1 = vcmask 1046528   ;;  %v1545_v33 = vmov 1983009808  }
   0xf   : > { %1436 = vmatprep.subr.mxu0 %v1542_v0  ;;  %s1429_s18 = sshll.u32 %s2167_s17, 6  ;;  %v190_v34 = vunpack.c.l.s4 %v1545_v33  ;;  %v192_v35 = vlaneseq  ;;  %v1546_v43 = vmov 1934713408   ;;  %s1552_s29 = smov 96   ;;  %vm283_vm2 = vcmask 130048  }
  0x10   : > { %s167_s21 = scalar_lea.vmem %s2153_s0, %s1429_s18  ;;  %v222_v44 = vunpack.c.l.s4 %v1546_v43  ;;  %s1553_s30 = smov 112   ;;  %vm285_vm3 = vcmask 261120   ;;  %vm287_vm4 = vcmask 392192   ;;  %vm289_vm5 = vcmask 523264  }
  0x11   : > { %v1607_v1 = vld [vmem:[%s167_s21 + $0x20] sm:$0xff]  ;;  %v183_v2 = vld [vmem:[%s167_s21 + $0x28] sm:$0x3]  ;;  %v1613_v8 = vld [vmem:[%s167_s21 + $0x30] sm:$0xff]  ;;  %v191_v36 = vunpack.c.0.s8 %v190_v34  ;;  %v193_v37 = vshrl.u32 %v192_v35, 7  ;;  %vm291_vm6 = vcmask 654336  }
  0x12   : > { %v1609_v3 = vld [vmem:[%s167_s21] sm:$0xff]  ;;  %v892_v4 = vrot.slane %v1607_v1, 2  ;;  %v893_v5 = vrot.slane %v183_v2, 2  ;;  %v179_v6 = vld [vmem:[%s167_s21 + $0x8] sm:$0x3]  ;;  %v895_v11 = vrot.slane %v1613_v8, 2  ;;  %v223_v49 = vunpack.c.0.s8 %v222_v44 }
  0x13   : > { %v886_v7 = vrot.slane %v1609_v3, 2  ;;  %v887_v9 = vrot.slane %v179_v6, 2  ;;  %v185_v10 = vld [vmem:[%s167_s21 + $0x38] sm:$0x3]  ;;  %v1616_v12 = vld [vmem:[%s167_s21 + $0x10] sm:$0xff]  ;;  %v536_v23 = vrot.slane %v1609_v3, 1  ;;  %v1658_v40 = vsub.s32 %v191_v36, %v193_v37 }
  0x14   : > { %v1619_v13 = vsel %vm885_vm0, %v892_v4, %v893_v5  ;;  %v896_v14 = vrot.slane %v185_v10, 2  ;;  %v181_v15 = vld [vmem:[%s167_s21 + $0x18] sm:$0x3]  ;;  %v889_v16 = vrot.slane %v1616_v12, 2  ;;  %v539_v21 = vrot.slane %v1616_v12, 1  ;;  %s1424_s5 = sshll.u32 %s2167_s17, 2 }
  0x15   : > { %1009 = vrot.lane.b32.xlu1 %v1619_v13, %s1543_s22  ;;  %v1625_v17 = vsel %vm885_vm0, %v886_v7, %v887_v9  ;;  %v890_v18 = vrot.slane %v181_v15, 2  ;;  %v540_v22 = vrot.slane %v181_v15, 1  ;;  %v537_v24 = vrot.slane %v179_v6, 1  ;;  %s175_s8 = scalar_lea.vmem %s2155_s2, %s1424_s5 }
  0x16   : > { %1005 = vrot.lane.b32.xlu0 %v1625_v17, %s1543_s22  ;;  %v1630_v19 = vsel %vm885_vm0, %v895_v11, %v896_v14  ;;  %v545_v26 = vrot.slane %v1613_v8, 1  ;;  %v546_v27 = vrot.slane %v185_v10, 1  ;;  %v542_v29 = vrot.slane %v1607_v1, 1 }
  0x17   : > { %v1633_v20 = vsel %vm885_vm0, %v889_v16, %v890_v18  ;;  %v541_v25 = vsel %vm535_vm1, %v539_v21, %v540_v22  ;;  %v538_v28 = vsel %vm535_vm1, %v536_v23, %v537_v24  ;;  %v543_v30 = vrot.slane %v183_v2, 1 }
  0x18   : > { %v547_v31 = vsel %vm535_vm1, %v545_v26, %v546_v27  ;;  %v902_v41 = vcombine.low %v1625_v17, %v1619_v13  ;;  %v918_v42 = vcombine.low %v1633_v20, %v1630_v19  ;;  %v1677_v51 = vsub.s32 %v223_v49, %v193_v37 }
  0x19   : > { %1011 = vrot.lane.b32.xlu1 %v1630_v19, %s1543_s22  ;;  %v544_v32 = vsel %vm535_vm1, %v542_v29, %v543_v30  ;;  %v568_v38 = vcombine.low %v541_v25, %v547_v31  ;;  %v569_v55 = vcombine.high %v541_v25, %v547_v31  ;;  %v903_v59 = vcombine.high %v1625_v17, %v1619_v13 }
  0x1a   : > { %1007 = vrot.lane.b32.xlu0 %v1633_v20, %s1543_s22  ;;  %v552_v39 = vcombine.low %v538_v28, %v544_v32  ;;  %v910_v47 = vrot.slane %v902_v41, %v1658_v40  ;;  %v926_v48 = vrot.slane %v918_v42, %v1658_v40  ;;  %v553_v56 = vcombine.high %v538_v28, %v544_v32 }
  0x1b   : > { %v576_v45 = vrot.slane %v568_v38, %v1658_v40  ;;  %v919_v60 = vcombine.high %v1633_v20, %v1630_v19  ;;  %v1707_v4 = vrot.slane %v569_v55, %v1658_v40  ;;  %v917_v6 = vrot.slane %v903_v59, %v1658_v40 }
  0x1c   : > { %v560_v46 = vrot.slane %v552_v39, %v1658_v40  ;;  %v934_v52 = vcombine.low %v910_v47, %v926_v48  ;;  %v935_v62 = vcombine.high %v910_v47, %v926_v48  ;;  %v1704_v2 = vrot.slane %v553_v56, %v1658_v40 }
  0x1d   : > { %1122 = vrot.lane.b32.xlu1 %v1633_v20, %s1544_s23  ;;  %v933_v7 = vrot.slane %v919_v60, %v1658_v40  ;;  %v187_v14 = vcombine.low %v1609_v3, %v1607_v1  ;;  %v203_v15 = vcombine.low %v1616_v12, %v1613_v8  ;;  %vm293_vm7 = vcmask 785408  }
  0x1e   : > { %1120 = vrot.lane.b32.xlu0 %v1625_v17, %s1544_s23  ;;  %v584_v50 = vcombine.low %v560_v46, %v576_v45  ;;  %v1687_v54 = vrot.slane %v934_v52, %v1677_v51  ;;  %v585_v58 = vcombine.high %v560_v46, %v576_v45  ;;  %v949_v5 = vrot.slane %v935_v62, %v1677_v51 }
  0x1f   : > { %v600_v10 = vcombine.low %v1704_v2, %v1707_v4  ;;  %v195_v18 = vrot.slane %v187_v14, %v1658_v40  ;;  %v951_v23 = vcombine.high %v917_v6, %v933_v7  ;;  %vm1554_vm8 = vmmov 0  }
  0x20   : > { %v1682_v53 = vrot.slane %v584_v50, %v1677_v51  ;;  %v966_v61 = vcombine.high %v1687_v54, %v1542_v0  ;;  %v599_v63 = vrot.slane %v585_v58, %v1677_v51  ;;  %v967_v11 = vcombine.high %v949_v5, %v1542_v0  ;;  %1446 = vmatprep.mubr.msk.f32.mxu0 %vm1554_vm8, %v1542_v0 }
  0x21   : > { %1126 = vrot.lane.b32.xlu1 %v1630_v19, %s1544_s23  ;;  %v608_v16 = vrot.slane %v600_v10, %v1677_v51  ;;  %v211_v19 = vrot.slane %v203_v15, %v1658_v40  ;;  %v965_v26 = vrot.slane %v951_v23, %v1677_v51  ;;  %vm295_vm9 = vcmask 916480  }
  0x22   : > { %1124 = vrot.lane.b32.xlu0 %v1619_v13, %s1544_s23  ;;  %v616_v57 = vcombine.high %v1682_v53, %v1542_v0  ;;  %v617_v9 = vcombine.high %v599_v63, %v1542_v0  ;;  %v950_v13 = vcombine.low %v917_v6, %v933_v7  ;;  %vm1247_vm10 = vcmask 1043456  }
  0x23   : > { %v618_v20 = vcombine.high %v608_v16, %v1542_v0  ;;  %v220_v21 = vcombine.high %v195_v18, %v211_v19  ;;  %v219_v24 = vcombine.low %v195_v18, %v211_v19  ;;  %v969_v29 = vcombine.high %v965_v26, %v1542_v0 }
  0x24   : > { %v958_v17 = vrot.slane %v950_v13, %v1677_v51  ;;  %vm1252_vm11 = vcmask 293888   ;;  %vm1336_vm12 = vcmask 7168   ;;  %vm1338_vm13 = vcmask 11264  }
  0x25   : > { %772 = vrot.lane.b32.xlu1 %v541_v25, %s1544_s23  ;;  %v1740_v27 = vrot.slane %v219_v24, %v1677_v51 }
  0x26   : > { %770 = vrot.lane.b32.xlu0 %v538_v28, %s1544_s23  ;;  %v968_v22 = vcombine.high %v958_v17, %v1542_v0 }
  0x29   : > { %776 = vrot.lane.b32.xlu1 %v547_v31, %s1544_s23 }
  0x2a   : > { %774 = vrot.lane.b32.xlu0 %v544_v32, %s1544_s23 }
  0x2d   : > { %657 = vrot.lane.b32.xlu1 %v541_v25, %s1543_s22  ;;  %v1735_v25 = vrot.slane %v220_v21, %v1677_v51 }
  0x2e   : > { %655 = vrot.lane.b32.xlu0 %v538_v28, %s1543_s22  ;;  %v251_v28 = vcombine.high %v1740_v27, %v1542_v0 }
  0x31   : > { %661 = vrot.lane.b32.xlu1 %v547_v31, %s1543_s22 }
  0x32   : > { %659 = vrot.lane.b32.xlu0 %v544_v32, %s1543_s22 }
  0x35   : > { %303 = vrot.lane.b32.xlu1 %v1616_v12, %s1543_s22 }
  0x36   : > { %301 = vrot.lane.b32.xlu0 %v1609_v3, %s1543_s22 }
  0x39   : > { %307 = vrot.lane.b32.xlu1 %v1613_v8, %s1543_s22 }
  0x3a   : > { %305 = vrot.lane.b32.xlu0 %v1607_v1, %s1543_s22 }
  0x3d   : > { %418 = vrot.lane.b32.xlu1 %v1616_v12, %s1544_s23 }
  0x3e   : > { %416 = vrot.lane.b32.xlu0 %v1609_v3, %s1544_s23 }
  0x41   : > { %422 = vrot.lane.b32.xlu1 %v1613_v8, %s1544_s23 }
  0x42   : > { %420 = vrot.lane.b32.xlu0 %v1607_v1, %s1544_s23 }
  0x45   : > { %621 = vrot.lane.b32.xlu1 %v616_v57, %s1547_s24 }
  0x46   : > { %971 = vrot.lane.b32.xlu0 %v966_v61, %s1547_s24 }
  0x49   : > { %625 = vrot.lane.b32.xlu1 %v599_v63, %s1548_s25 }
  0x4a   : > { %975 = vrot.lane.b32.xlu0 %v949_v5, %s1548_s25 }
  0x4d   : > { %629 = vrot.lane.b32.xlu1 %v617_v9, %s1549_s26 }
  0x4e   : > { %979 = vrot.lane.b32.xlu0 %v967_v11, %s1549_s26 }
  0x51   : > { %633 = vrot.lane.b32.xlu1 %v608_v16, %s1550_s27 }
  0x52   : > { %983 = vrot.lane.b32.xlu0 %v958_v17, %s1550_s27 }
  0x55   : > { %637 = vrot.lane.b32.xlu1 %v618_v20, %s1551_s28 }
  0x56   : > { %987 = vrot.lane.b32.xlu0 %v968_v22, %s1551_s28 }
  0x59   : > { %260 = vrot.lane.b32.xlu1 %v1735_v25, %s1548_s25 }
  0x5a   : > { %991 = vrot.lane.b32.xlu0 %v965_v26, %s1552_s29 }
  0x5e   : > { %256 = vrot.lane.b32.xlu0 %v251_v28, %s1547_s24 }
  0x62   : > { %995 = vrot.lane.b32.xlu0 %v969_v29, %s1553_s30 }
  0x87   : > { %v1750_v30 = vpop.permute.xlu1 %1009 }
  0x88   : > { %v1752_v31 = vpop.permute.xlu0 %1005 }
  0x89   : > { %v1017_v11 = vcombine.low %v1752_v31, %v1750_v30 }
  0x8b   : > { %v1754_v32 = vpop.permute.xlu1 %1011  ;;  %v1807_v22 = vrot.slane %v1017_v11, %v1658_v40 }
  0x8c   : > { %v1756_v33 = vpop.permute.xlu0 %1007 }
  0x8d   : > { %v1033_v63 = vcombine.low %v1756_v33, %v1754_v32 }
  0x8f   : > { %v1758_v34 = vpop.permute.xlu1 %1122  ;;  %v1803_v16 = vrot.slane %v1033_v63, %v1658_v40 }
  0x90   : > { %v1760_v35 = vpop.permute.xlu0 %1120 }
  0x93   : > { %v1762_v36 = vpop.permute.xlu1 %1126 }
  0x94   : > { %v1764_v37 = vpop.permute.xlu0 %1124 }
  0x97   : > { %v1766_v38 = vpop.permute.xlu1 %772 }
  0x98   : > { %v1768_v39 = vpop.permute.xlu0 %770 }
  0x9b   : > { %v1770_v41 = vpop.permute.xlu1 %776 }
  0x9c   : > { %v1772_v42 = vpop.permute.xlu0 %774  ;;  %v798_v23 = vcombine.low %v1766_v38, %v1770_v41 }
  0x9d   : > { %v782_v28 = vcombine.low %v1768_v39, %v1772_v42 }
  0x9f   : > { %v1774_v43 = vpop.permute.xlu1 %657 }
  0xa0   : > { %v1776_v44 = vpop.permute.xlu0 %655 }
  0xa3   : > { %v1778_v45 = vpop.permute.xlu1 %661 }
  0xa4   : > { %v1780_v46 = vpop.permute.xlu0 %659 }
  0xa7   : > { %v304_v47 = vpop.permute.xlu1 %303 }
  0xa8   : > { %v302_v48 = vpop.permute.xlu0 %301 }
  0xab   : > { %v308_v49 = vpop.permute.xlu1 %307 }
  0xac   : > { %v329_v50 = vcombine.low %v304_v47, %v308_v49  ;;  %v330_v52 = vcombine.high %v304_v47, %v308_v49  ;;  %v306_v55 = vpop.permute.xlu0 %305 }
  0xad   : > { %v313_v56 = vcombine.low %v302_v48, %v306_v55  ;;  %v314_v57 = vcombine.high %v302_v48, %v306_v55  ;;  %v1050_v55 = vcombine.high %v1807_v22, %v1803_v16 }
  0xae   : > { %v337_v58 = vrot.slane %v329_v50, %v1658_v40  ;;  %v1784_v59 = vrot.slane %v330_v52, %v1658_v40  ;;  %v1018_v50 = vcombine.high %v1752_v31, %v1750_v30  ;;  %v1034_v52 = vcombine.high %v1756_v33, %v1754_v32 }
  0xaf   : > { %v321_v60 = vrot.slane %v313_v56, %v1658_v40  ;;  %v1788_v61 = vrot.slane %v314_v57, %v1658_v40  ;;  %v419_v62 = vpop.permute.xlu1 %418  ;;  %v1148_v30 = vcombine.low %v1758_v34, %v1762_v36  ;;  %v1132_v31 = vcombine.low %v1760_v35, %v1764_v37 }
  0xb0   : > { %v417_v5 = vpop.permute.xlu0 %416  ;;  %v1841_v32 = vrot.slane %v798_v23, %v1658_v40  ;;  %v1846_v33 = vrot.slane %v782_v28, %v1658_v40  ;;  %v799_v23 = vcombine.high %v1766_v38, %v1770_v41 }
  0xb1   : > { %v345_v6 = vcombine.low %v321_v60, %v337_v58  ;;  %v346_v7 = vcombine.high %v321_v60, %v337_v58  ;;  %v361_v9 = vcombine.low %v1788_v61, %v1784_v59  ;;  %v362_v10 = vcombine.high %v1788_v61, %v1784_v59 }
  0xb3   : > { %v423_v13 = vpop.permute.xlu1 %422  ;;  %v360_v14 = vrot.slane %v346_v7, %v1677_v51  ;;  %v1800_v15 = vrot.slane %v345_v6, %v1677_v51 }
  0xb4   : > { %v444_v17 = vcombine.low %v419_v62, %v423_v13  ;;  %v445_v18 = vcombine.high %v419_v62, %v423_v13  ;;  %v421_v19 = vpop.permute.xlu0 %420  ;;  %v1854_v13 = vrot.slane %v1034_v52, %v1658_v40 }
  0xb5   : > { %v428_v20 = vcombine.low %v417_v5, %v421_v19  ;;  %v429_v21 = vcombine.high %v417_v5, %v421_v19  ;;  %386 = vrot.lane.b32.xlu1 %v360_v14, %s1548_s25  ;;  %v377_v48 = vcombine.high %v1800_v15, %v1542_v0  ;;  %v378_v5 = vcombine.high %v360_v14, %v1542_v0 }
  0xb6   : > { %v452_v24 = vrot.slane %v444_v17, %v1658_v40  ;;  %v1813_v26 = vrot.slane %v445_v18, %v1658_v40  ;;  %v1133_v19 = vcombine.high %v1760_v35, %v1764_v37  ;;  %v1032_v35 = vrot.slane %v1018_v50, %v1658_v40 }
  0xb7   : > { %v436_v29 = vrot.slane %v428_v20, %v1658_v40  ;;  %v1819_v47 = vrot.slane %v429_v21, %v1658_v40  ;;  %v622_v49 = vpop.permute.xlu1 %621  ;;  %v1865_v20 = vrot.slane %v1148_v30, %v1658_v40  ;;  %v1868_v21 = vrot.slane %v1132_v31, %v1658_v40 }
  0xb8   : > { %v972_v56 = vpop.permute.xlu0 %971  ;;  %v648_v57 = vsel %vm283_vm2, %v1682_v53, %v622_v49  ;;  %v1878_v37 = vrot.slane %v1050_v55, %v1677_v51  ;;  %v1065_v38 = vcombine.low %v1032_v35, %v1854_v13  ;;  %v813_v50 = vrot.slane %v799_v23, %v1658_v40 }
  0xb9   : > { %v460_v58 = vcombine.low %v436_v29, %v452_v24  ;;  %v461_v60 = vcombine.high %v436_v29, %v452_v24  ;;  %v476_v62 = vcombine.low %v1819_v47, %v1813_v26  ;;  %v477_v63 = vcombine.high %v1819_v47, %v1813_v26  ;;  %382 = vrot.lane.b32.xlu1 %v377_v48, %s1547_s24 }
  0xba   : > { %v998_v53 = vsel %vm283_vm2, %v1687_v54, %v972_v56  ;;  %v1149_v54 = vcombine.high %v1758_v34, %v1762_v36  ;;  %v783_v34 = vcombine.high %v1768_v39, %v1772_v42  ;;  %v815_v36 = vcombine.high %v1846_v33, %v1841_v32 }
  0xbb   : > { %v475_v6 = vrot.slane %v461_v60, %v1677_v51  ;;  %v1851_v7 = vrot.slane %v460_v58, %v1677_v51  ;;  %v626_v11 = vpop.permute.xlu1 %625  ;;  %v1147_v42 = vrot.slane %v1133_v19, %v1658_v40  ;;  %v1165_v49 = vcombine.high %v1868_v21, %v1865_v20 }
  0xbc   : > { %v976_v17 = vpop.permute.xlu0 %975  ;;  %v649_v18 = vsel %vm285_vm3, %v648_v57, %v626_v11  ;;  %v1163_v41 = vrot.slane %v1149_v54, %v1658_v40  ;;  %v797_v52 = vrot.slane %v783_v34, %v1658_v40  ;;  %v683_v55 = vcombine.low %v1774_v43, %v1778_v45 }
  0xbd   : > { %390 = vrot.lane.b32.xlu1 %v378_v5, %s1549_s26  ;;  %501 = vrot.lane.b32.xlu0 %v475_v6, %s1548_s25  ;;  %v999_v14 = vsel %vm285_vm3, %v998_v53, %v976_v17  ;;  %v492_v24 = vcombine.high %v1851_v7, %v1542_v0  ;;  %v667_v56 = vcombine.low %v1776_v44, %v1780_v46 }
  0xbe   : > { %v829_v57 = vrot.slane %v815_v36, %v1677_v51  ;;  %v493_v58 = vcombine.high %v475_v6, %v1542_v0  ;;  %v1180_v5 = vcombine.low %v1147_v42, %v1163_v41  ;;  %v1073_v11 = vrot.slane %v1065_v38, %v1677_v51 }
  0xbf   : > { %v630_v28 = vpop.permute.xlu1 %629  ;;  %v830_v17 = vcombine.low %v797_v52, %v813_v50  ;;  %v675_v54 = vrot.slane %v667_v56, %v1658_v40  ;;  %v1179_v6 = vrot.slane %v1165_v49, %v1677_v51  ;;  %v1066_v36 = vcombine.high %v1032_v35, %v1854_v13 }
  0xc0   : > { %v980_v29 = vpop.permute.xlu0 %979  ;;  %v650_v48 = vsel %vm287_vm4, %v649_v18, %v630_v28  ;;  %v691_v18 = vrot.slane %v683_v55, %v1658_v40  ;;  %v684_v28 = vcombine.high %v1774_v43, %v1778_v45  ;;  %v1181_v13 = vcombine.high %v1147_v42, %v1163_v41 }
  0xc1   : > { %1090 = vrot.lane.b32.xlu1 %v1878_v37, %s1548_s25  ;;  %497 = vrot.lane.b32.xlu0 %v492_v24, %s1547_s24  ;;  %v1000_v39 = vsel %vm287_vm4, %v999_v14, %v980_v29  ;;  %v1188_v24 = vrot.slane %v1180_v5, %v1677_v51  ;;  %v668_v29 = vcombine.high %v1776_v44, %v1780_v46 }
  0xc2   : > { %v838_v38 = vrot.slane %v830_v17, %v1677_v51  ;;  %v814_v35 = vcombine.low %v1846_v33, %v1841_v32  ;;  %v1080_v43 = vrot.slane %v1066_v36, %v1677_v51  ;;  %v831_v45 = vcombine.high %v797_v52, %v813_v50 }
  0xc3   : > { %v634_v60 = vpop.permute.xlu1 %633  ;;  %v698_v44 = vrot.slane %v684_v28, %v1658_v40  ;;  %v682_v46 = vrot.slane %v668_v29, %v1658_v40  ;;  %v1049_v56 = vcombine.low %v1807_v22, %v1803_v16  ;;  %v1195_v32 = vrot.slane %v1181_v13, %v1677_v51 }
  0xc4   : > { %v984_v30 = vpop.permute.xlu0 %983  ;;  %v651_v31 = vsel %vm289_vm5, %v650_v48, %v634_v60  ;;  %v700_v48 = vcombine.high %v675_v54, %v691_v18  ;;  %v845_v42 = vrot.slane %v831_v45, %v1677_v51  ;;  %v1939_v33 = vrot.slane %v814_v35, %v1677_v51 }
  0xc5   : > { %855 = vrot.lane.b32.xlu1 %v829_v57, %s1548_s25  ;;  %505 = vrot.lane.b32.xlu0 %v493_v58, %s1549_s26  ;;  %v1001_v53 = vsel %vm289_vm5, %v1000_v39, %v984_v30  ;;  %v715_v41 = vcombine.low %v682_v46, %v698_v44  ;;  %v1164_v50 = vcombine.low %v1868_v21, %v1865_v20 }
  0xc6   : > { %v714_v55 = vrot.slane %v700_v48, %v1677_v51  ;;  %v846_v52 = vcombine.high %v1939_v33, %v1542_v0  ;;  %v1949_v22 = vrot.slane %v1049_v56, %v1677_v51  ;;  %v1082_v58 = vcombine.high %v1878_v37, %v1542_v0 }
  0xc7   : > { %v638_v19 = vpop.permute.xlu1 %637  ;;  %v723_v16 = vrot.slane %v715_v41, %v1677_v51  ;;  %v1958_v20 = vrot.slane %v1164_v50, %v1677_v51  ;;  %v699_v21 = vcombine.low %v675_v54, %v691_v18  ;;  %v847_v30 = vcombine.high %v829_v57, %v1542_v0 }
  0xc8   : > { %v988_v14 = vpop.permute.xlu0 %987  ;;  %v1909_v23 = vsel %vm291_vm6, %v651_v31, %v638_v19  ;;  %v1081_v60 = vcombine.high %v1949_v22, %v1542_v0  ;;  %v1083_v37 = vcombine.high %v1073_v11, %v1542_v0  ;;  %v848_v57 = vcombine.high %v838_v38, %v1542_v0 }
  0xc9   : > { %1098 = vrot.lane.b32.xlu1 %v1073_v11, %s1550_s27  ;;  %1205 = vrot.lane.b32.xlu0 %v1179_v6, %s1548_s25  ;;  %v1002_v34 = vsel %vm291_vm6, %v1001_v53, %v988_v14  ;;  %v1196_v31 = vcombine.high %v1958_v20, %v1542_v0  ;;  %v1197_v53 = vcombine.high %v1179_v6, %v1542_v0 }
  0xca   : > { %v1970_v5 = vrot.slane %v699_v21, %v1677_v51  ;;  %v1084_v11 = vcombine.high %v1080_v43, %v1542_v0  ;;  %v1198_v18 = vcombine.high %v1188_v24, %v1542_v0  ;;  %v1199_v54 = vcombine.high %v1195_v32, %v1542_v0 }
  0xcb   : > { %v732_v6 = vcombine.high %v714_v55, %v1542_v0  ;;  %v849_v19 = vcombine.high %v845_v42, %v1542_v0  ;;  %v733_v14 = vcombine.high %v723_v16, %v1542_v0  ;;  %v716_v36 = vcombine.high %v682_v46, %v698_v44 }
  0xcc   : > { %v992_v39 = vpop.permute.xlu0 %991  ;;  %v731_v17 = vcombine.high %v1970_v5, %v1542_v0  ;;  %v369_v28 = vrot.slane %v361_v9, %v1677_v51  ;;  %v252_v9 = vcombine.high %v1735_v25, %v1542_v0  ;;  %v376_v13 = vrot.slane %v362_v10, %v1677_v51  ;;  %v2047_v10 = vpop.permute.xlu1 %260 }
  0xcd   : > { %863 = vrot.lane.b32.xlu1 %v838_v38, %s1550_s27  ;;  %1213 = vrot.lane.b32.xlu0 %v1188_v24, %s1550_s27  ;;  %v1924_v49 = vsel %vm293_vm7, %v1002_v34, %v992_v39  ;;  %v601_v34 = vcombine.high %v1704_v2, %v1707_v4  ;;  %v484_v24 = vrot.slane %v476_v62, %v1677_v51 }
  0xce   : > { %v188_v2 = vcombine.high %v1609_v3, %v1607_v1  ;;  %v204_v4 = vcombine.high %v1616_v12, %v1613_v8  ;;  %v730_v48 = vrot.slane %v716_v36, %v1677_v51  ;;  %v379_v39 = vcombine.high %v369_v28, %v1542_v0 }
  0xcf   : > { %v615_v29 = vrot.slane %v601_v34, %v1677_v51  ;;  %v494_v8 = vcombine.high %v484_v24, %v1542_v0  ;;  %v380_v45 = vcombine.high %v376_v13, %v1542_v0 }
  0xd0   : > { %v202_v62 = vrot.slane %v188_v2, %v1658_v40  ;;  %v218_v38 = vrot.slane %v204_v4, %v1658_v40  ;;  %v734_v25 = vcombine.high %v730_v48, %v1542_v0  ;;  %v491_v40 = vrot.slane %v477_v63, %v1677_v51  ;;  %v2049_v47 = vpop.permute.xlu0 %256 }
  0xd1   : > { %1106 = vrot.lane.b32.xlu1 %v1080_v43, %s1552_s29  ;;  %740 = vrot.lane.b32.xlu0 %v714_v55, %s1548_s25  ;;  %v619_v1 = vcombine.high %v615_v29, %v1542_v0 }
  0xd2   : > { %v235_v3 = vcombine.low %v202_v62, %v218_v38  ;;  %v236_v43 = vcombine.high %v202_v62, %v218_v38  ;;  %v495_v59 = vcombine.high %v491_v40, %v1542_v0 }
  0xd4   : > { %v243_v12 = vrot.slane %v235_v3, %v1677_v51  ;;  %v250_v26 = vrot.slane %v236_v43, %v1677_v51  ;;  %v996_v44 = vpop.permute.xlu0 %995 }
  0xd5   : > { %871 = vrot.lane.b32.xlu1 %v845_v42, %s1552_s29  ;;  %1221 = vrot.lane.b32.xlu0 %v1195_v32, %s1552_s29 }
  0xd6   : > { %v253_v35 = vcombine.high %v243_v12, %v1542_v0  ;;  %v254_v61 = vcombine.high %v250_v26, %v1542_v0 }
  0xd9   : > { %851 = vrot.lane.b32.xlu1 %v846_v52, %s1547_s24  ;;  %748 = vrot.lane.b32.xlu0 %v723_v16, %s1550_s27 }
  0xdd   : > { %1094 = vrot.lane.b32.xlu1 %v1082_v58, %s1549_s26  ;;  %1086 = vrot.lane.b32.xlu0 %v1081_v60, %s1547_s24 }
  0xe1   : > { %859 = vrot.lane.b32.xlu1 %v847_v30, %s1549_s26  ;;  %1201 = vrot.lane.b32.xlu0 %v1196_v31, %s1547_s24 }
  0xe5   : > { %1102 = vrot.lane.b32.xlu1 %v1083_v37, %s1551_s28  ;;  %1209 = vrot.lane.b32.xlu0 %v1197_v53, %s1549_s26 }
  0xe9   : > { %867 = vrot.lane.b32.xlu1 %v848_v57, %s1551_s28  ;;  %736 = vrot.lane.b32.xlu0 %v731_v17, %s1547_s24 }
  0xed   : > { %1110 = vrot.lane.b32.xlu1 %v1084_v11, %s1553_s30  ;;  %1217 = vrot.lane.b32.xlu0 %v1198_v18, %s1551_s28 }
  0xf1   : > { %1225 = vrot.lane.b32.xlu1 %v1199_v54, %s1553_s30  ;;  %744 = vrot.lane.b32.xlu0 %v732_v6, %s1549_s26 }
  0xf5   : > { %875 = vrot.lane.b32.xlu1 %v849_v19, %s1553_s30  ;;  %752 = vrot.lane.b32.xlu0 %v733_v14, %s1551_s28 }
  0xf9   : > { %509 = vrot.lane.b32.xlu1 %v484_v24, %s1550_s27  ;;  %394 = vrot.lane.b32.xlu0 %v369_v28, %s1550_s27 }
  0xfd   : > { %756 = vrot.lane.b32.xlu1 %v730_v48, %s1552_s29  ;;  %641 = vrot.lane.b32.xlu0 %v615_v29, %s1552_s29 }
 0x101   : > { %398 = vrot.lane.b32.xlu1 %v379_v39, %s1551_s28  ;;  %264 = vrot.lane.b32.xlu0 %v252_v9, %s1549_s26 }
 0x105   : > { %645 = vrot.lane.b32.xlu1 %v619_v1, %s1553_s30  ;;  %513 = vrot.lane.b32.xlu0 %v494_v8, %s1551_s28 }
 0x109   : > { %268 = vrot.lane.b32.xlu1 %v243_v12, %s1550_s27  ;;  %760 = vrot.lane.b32.xlu0 %v734_v25, %s1553_s30 }
 0x10d   : > { %517 = vrot.lane.b32.xlu1 %v491_v40, %s1552_s29  ;;  %402 = vrot.lane.b32.xlu0 %v376_v13, %s1552_s29 }
 0x111   : > { %406 = vrot.lane.b32.xlu1 %v380_v45, %s1553_s30  ;;  %272 = vrot.lane.b32.xlu0 %v253_v35, %s1551_s28  ;;  %v1004_v45 = vsel %vm295_vm9, %v1924_v49, %v996_v44 }
 0x115   : > { %276 = vrot.lane.b32.xlu1 %v250_v26, %s1552_s29  ;;  %521 = vrot.lane.b32.xlu0 %v495_v59, %s1553_s30 }
 0x119   : > { %280 = vrot.lane.b32.xlu0 %v254_v61, %s1553_s30 }
 0x127   : > { %v387_v63 = vpop.permute.xlu1 %386 }
 0x12b   : > { %v383_v46 = vpop.permute.xlu1 %382 }
 0x12c   : > { %v409_v51 = vsel %vm283_vm2, %v1800_v15, %v383_v46 }
 0x12d   : > { %v410_v55 = vsel %vm285_vm3, %v409_v51, %v387_v63 }
 0x12f   : > { %v391_v56 = vpop.permute.xlu1 %390  ;;  %v502_v41 = vpop.permute.xlu0 %501 }
 0x130   : > { %v2055_v42 = vsel %vm287_vm4, %v410_v55, %v391_v56 }
 0x133   : > { %v1091_v32 = vpop.permute.xlu1 %1090  ;;  %v498_v50 = vpop.permute.xlu0 %497 }
 0x134   : > { %v524_v52 = vsel %vm283_vm2, %v1851_v7, %v498_v50 }
 0x135   : > { %v525_v16 = vsel %vm285_vm3, %v524_v52, %v502_v41 }
 0x137   : > { %v856_v58 = vpop.permute.xlu1 %855  ;;  %v506_v60 = vpop.permute.xlu0 %505 }
 0x138   : > { %v2061_v21 = vsel %vm287_vm4, %v525_v16, %v506_v60 }
 0x13b   : > { %v1099_v15 = vpop.permute.xlu1 %1098  ;;  %v1206_v30 = vpop.permute.xlu0 %1205 }
 0x13f   : > { %v864_v31 = vpop.permute.xlu1 %863  ;;  %v1214_v37 = vpop.permute.xlu0 %1213 }
 0x143   : > { %v1107_v53 = vpop.permute.xlu1 %1106  ;;  %v741_v57 = vpop.permute.xlu0 %740 }
 0x147   : > { %v872_v17 = vpop.permute.xlu1 %871  ;;  %v1222_v11 = vpop.permute.xlu0 %1221 }
 0x14b   : > { %v852_v18 = vpop.permute.xlu1 %851  ;;  %v749_v54 = vpop.permute.xlu0 %748 }
 0x14c   : > { %v878_v51 = vsel %vm283_vm2, %v1939_v33, %v852_v18 }
 0x14d   : > { %v879_v55 = vsel %vm285_vm3, %v878_v51, %v856_v58 }
 0x14f   : > { %v1095_v6 = vpop.permute.xlu1 %1094  ;;  %v1087_v19 = vpop.permute.xlu0 %1086 }
 0x150   : > { %v1113_v7 = vsel %vm283_vm2, %v1949_v22, %v1087_v19 }
 0x151   : > { %v1114_v36 = vsel %vm285_vm3, %v1113_v7, %v1091_v32 }
 0x152   : > { %v1115_v2 = vsel %vm287_vm4, %v1114_v36, %v1095_v6  ;;  %v284_v36 = vsel %vm283_vm2, %v1740_v27, %v2049_v47 }
 0x153   : > { %v860_v14 = vpop.permute.xlu1 %859  ;;  %v1202_v34 = vpop.permute.xlu0 %1201  ;;  %v1116_v4 = vsel %vm289_vm5, %v1115_v2, %v1099_v15 }
 0x154   : > { %v1228_v29 = vsel %vm283_vm2, %v1958_v20, %v1202_v34  ;;  %v880_v44 = vsel %vm287_vm4, %v879_v55, %v860_v14 }
 0x155   : > { %v1229_v48 = vsel %vm285_vm3, %v1228_v29, %v1206_v30  ;;  %v881_v32 = vsel %vm289_vm5, %v880_v44, %v864_v31 }
 0x157   : > { %v1103_v24 = vpop.permute.xlu1 %1102  ;;  %v1210_v28 = vpop.permute.xlu0 %1209 }
 0x158   : > { %v1117_v38 = vsel %vm291_vm6, %v1116_v4, %v1103_v24  ;;  %v1230_v22 = vsel %vm287_vm4, %v1229_v48, %v1210_v28 }
 0x159   : > { %v1118_v1 = vsel %vm293_vm7, %v1117_v38, %v1107_v53  ;;  %v1231_v3 = vsel %vm289_vm5, %v1230_v22, %v1214_v37 }
 0x15b   : > { %v868_v9 = vpop.permute.xlu1 %867  ;;  %v737_v62 = vpop.permute.xlu0 %736 }
 0x15c   : > { %v763_v41 = vsel %vm283_vm2, %v1970_v5, %v737_v62  ;;  %v882_v16 = vsel %vm291_vm6, %v881_v32, %v868_v9 }
 0x15d   : > { %v764_v60 = vsel %vm285_vm3, %v763_v41, %v741_v57  ;;  %v883_v33 = vsel %vm293_vm7, %v882_v16, %v872_v17 }
 0x15f   : > { %v1111_v39 = vpop.permute.xlu1 %1110  ;;  %v1218_v8 = vpop.permute.xlu0 %1217 }
 0x160   : > { %v1119_v20 = vsel %vm295_vm9, %v1118_v1, %v1111_v39  ;;  %v1232_v12 = vsel %vm291_vm6, %v1231_v3, %v1218_v8 }
 0x161   : > { %v1245_v25 = vrot.slane %v1119_v20, 4  ;;  %v1233_v35 = vsel %vm293_vm7, %v1232_v12, %v1222_v11  ;;  %v186_v12 = vld [vmem:[%s2154_s1] sm:$0xf] }
 0x163   : > { %v1226_v40 = vpop.permute.xlu1 %1225  ;;  %v745_v13 = vpop.permute.xlu0 %744  ;;  %v1251_v26 = vsel %vm1247_vm10, %v1004_v45, %v1245_v25 }
 0x164   : > { %v1234_v43 = vsel %vm295_vm9, %v1233_v35, %v1226_v40  ;;  %v765_v15 = vsel %vm287_vm4, %v764_v60, %v745_v13 }
 0x165   : > { %1437 = vmatpush3.msk.msra.mxu0 %vm1247_vm10, %v1234_v43  ;;  %v766_v53 = vsel %vm289_vm5, %v765_v15, %v749_v54 }
 0x166   : > { %1438 = vmatprep.subr.mxu0 %v1542_v0 }
 0x167   : > { %v876_v59 = vpop.permute.xlu1 %875  ;;  %1439 = vmatpush3.msra.mxu0 %v1251_v26  ;;  %v753_v61 = vpop.permute.xlu0 %752 }
 0x168   : > { %1440 = vmatprep.subr.mxu0 %v1542_v0  ;;  %v884_v37 = vsel %vm295_vm9, %v883_v33, %v876_v59  ;;  %v767_v5 = vsel %vm291_vm6, %v766_v53, %v753_v61 }
 0x169   : > { %v1242_v11 = vrot.slane %v884_v37, 4 }
 0x16b   : > { %v510_v63 = vpop.permute.xlu1 %509  ;;  %v395_v46 = vpop.permute.xlu0 %394 }
 0x16c   : > { %v527_v28 = vsel %vm289_vm5, %v2061_v21, %v510_v63  ;;  %v412_v29 = vsel %vm289_vm5, %v2055_v42, %v395_v46 }
 0x16f   : > { %v757_v56 = vpop.permute.xlu1 %756  ;;  %v642_v49 = vpop.permute.xlu0 %641 }
 0x170   : > { %v768_v31 = vsel %vm293_vm7, %v767_v5, %v757_v56  ;;  %v653_v14 = vsel %vm293_vm7, %v1909_v23, %v642_v49  ;;  %v286_v23 = vsel %vm285_vm3, %v284_v36, %v2047_v10 }
 0x173   : > { %v399_v50 = vpop.permute.xlu1 %398  ;;  %v265_v52 = vpop.permute.xlu0 %264 }
 0x174   : > { %v413_v2 = vsel %vm291_vm6, %v412_v29, %v399_v50  ;;  %v288_v62 = vsel %vm287_vm4, %v286_v23, %v265_v52 }
 0x177   : > { %v646_v58 = vpop.permute.xlu1 %645  ;;  %v514_v30 = vpop.permute.xlu0 %513 }
 0x178   : > { %v654_v24 = vsel %vm295_vm9, %v653_v14, %v646_v58  ;;  %v528_v4 = vsel %vm291_vm6, %v527_v28, %v514_v30 }
 0x179   : > { %v1239_v48 = vrot.slane %v654_v24, 4 }
 0x17b   : > { %v269_v18 = vpop.permute.xlu1 %268  ;;  %v761_v6 = vpop.permute.xlu0 %760 }
 0x17c   : > { %v769_v19 = vsel %vm295_vm9, %v768_v31, %v761_v6  ;;  %v290_v22 = vsel %vm289_vm5, %v288_v62, %v269_v18 }
 0x17d   : > { %v1250_v57 = vsel %vm1247_vm10, %v769_v19, %v1242_v11 }
 0x17e   : > { %1441 = vmatpush3.msra.mxu0 %v1250_v57 }
 0x17f   : > { %v518_v7 = vpop.permute.xlu1 %517  ;;  %v403_v17 = vpop.permute.xlu0 %402  ;;  %1442 = vmatprep.subr.mxu0 %v1542_v0 }
 0x180   : > { %v529_v9 = vsel %vm293_vm7, %v528_v4, %v518_v7  ;;  %v414_v27 = vsel %vm293_vm7, %v413_v2, %v403_v17 }
 0x183   : > { %v407_v54 = vpop.permute.xlu1 %406  ;;  %v273_v34 = vpop.permute.xlu0 %272 }
 0x184   : > { %v415_v21 = vsel %vm295_vm9, %v414_v27, %v407_v54  ;;  %v292_v1 = vsel %vm291_vm6, %v290_v22, %v273_v34 }
 0x185   : > { %v1236_v10 = vrot.slane %v415_v21, 4 }
 0x187   : > { %v522_v47 = vpop.permute.xlu0 %521  ;;  %v277_v38 = vpop.permute.xlu1 %276 }
 0x188   : > { %v530_v42 = vsel %vm295_vm9, %v529_v9, %v522_v47  ;;  %v294_v3 = vsel %vm293_vm7, %v292_v1, %v277_v38 }
 0x189   : > { %v1249_v39 = vsel %vm1247_vm10, %v530_v42, %v1239_v48 }
 0x18a   : > { %1443 = vmatpush3.msra.mxu0 %v1249_v39 }
 0x18b   : > { %v281_v8 = vpop.permute.xlu0 %280  ;;  %1444 = vmatprep.subr.mxu0 %v1542_v0 }
 0x18c   : > { %v296_v20 = vsel %vm295_vm9, %v294_v3, %v281_v8 }
 0x18d   : > { %v1248_v25 = vsel %vm1247_vm10, %v296_v20, %v1236_v10 }
 0x18e   : > { %1445 = vmatpush3.msra.mxu0 %v1248_v25 }
 0x18f   : > { %1447 = vmatmul.mubr.msk.f32.vlgmr.msra.gmra.mxu0 %vm1252_vm11, %v186_v12 }
 0x24f   : > { %v1325_v40 = vpop.f32.mrf.mxu0 }
 0x250   : > { %v1332_v13 = vmul.f32 %v1325_v40, %v1325_v40  ;;  %v1329_v35 = vsel %vm1247_vm10, %v1325_v40, 0.0 }
 0x251   : > { %1330 = vadd.xlane.f32.xlu1 %v1329_v35  ;;  %v1448_v43 = vpop.f32.mrf.mxu0 }
 0x252   : > { %v1333_v45 = vsel %vm1247_vm10, %v1332_v13, 0.0 }
 0x253   : > { %1334 = vadd.xlane.f32.xlu0 %v1333_v45 }
 0x2da   : > { %v1331_v0 = vpop.xlane.xlu1 %1330 }
 0x2dc   : > { %v1335_v26 = vpop.xlane.xlu0 %1334 }
 0x2dd   : > { %v1337_v59 = vsel %vm1336_vm12, %v1331_v0, %v1335_v26 }
 0x2de   : > { %1339 = vst.msk [vmem:[%s175_s8] sm:$0xf] %vm1338_vm13, %v1337_v59 }
 0x2df PF: > { %s12_s13 = sadd.s32 1, %s1540_s13   ;;  %s2156_s9 = smov %s1532_s11 }
 0x2e0   : > { %p9_p6 = scmp.ge.s32.totalorder %s12_s13, 6   ;;  %s2157_s10 = smov %s1536_s12 }
 0x2e1   : > { %s2158_s11 = smov %s2161_s14  ;;  %s2159_s12 = smov %s2165_s15 }
 0x2e2   :  { %11 = sbr.rel (!%p9_p6) target bundleno = 3 (0x3), region = 58 }

</bundles_post_ra>
